<compile_context>
chip_gen: v7x
topology: tpu7x:2x2x1
jax: 0.10.0
libtpu: 0.0.40
codegen_flags: <defaults>
</compile_context>

<pallas_src>
import functools

import jax
import jax.numpy as jnp
from jax.experimental import pallas as pl
from jax.experimental.pallas import tpu as pltpu


def _confidence_bce(x_ref, t_ref, conf_refs, weights):
    """Elementwise confidence-weighted BCE for one (tile_rows, D) block."""
    x = x_ref[...].astype(jnp.float32)
    t = t_ref[...].astype(jnp.float32)

    # confidence = 1 + sum_i w_i * c_i
    conf = jnp.float32(1.0)
    for w, c_ref in zip(weights, conf_refs):
        conf = conf + jnp.float32(w) * c_ref[...].astype(jnp.float32)

    # PyTorch binary_cross_entropy clamps the log terms at -100.
    log_p = jnp.maximum(jnp.log(x), -100.0)
    log_1mp = jnp.maximum(jnp.log1p(-x), -100.0)
    # -(t*log_p + (1-t)*log_1mp) == -(log_1mp + t*(log_p - log_1mp))
    bce = -(log_1mp + t * (log_p - log_1mp))
    return conf * bce


def _partial_sum_kernel(*refs, weights, tile_rows, valid_rows, needs_mask):
    """One grid step: (tile_rows, D) block -> (8, D) partial sum of conf*BCE."""
    n_conf = len(weights)
    x_ref, t_ref = refs[0], refs[1]
    conf_refs = refs[2:2 + n_conf]
    o_ref = refs[2 + n_conf]

    contrib = _confidence_bce(x_ref, t_ref, conf_refs, weights)

    if needs_mask:
        # Zero out rows past the true batch size (tail tile / padded block).
        row_ids = jax.lax.broadcasted_iota(jnp.int32, contrib.shape, 0)
        global_rows = pl.program_id(0) * tile_rows + row_ids
        contrib = jnp.where(global_rows < valid_rows, contrib, 0.0)

    # Sublane-aligned partial reduce: pure VALU vreg adds, no cross-lane XLU.
    d = contrib.shape[-1]
    o_ref[...] = contrib.reshape(tile_rows // 8, 8, d).sum(axis=0)


def _elementwise_kernel(*refs, weights):
    """One grid step for reduction='none': write conf*BCE elementwise."""
    n_conf = len(weights)
    x_ref, t_ref = refs[0], refs[1]
    conf_refs = refs[2:2 + n_conf]
    o_ref = refs[2 + n_conf]
    o_ref[...] = _confidence_bce(x_ref, t_ref, conf_refs, weights).astype(o_ref.dtype)


def implicit_feedback_bce_loss(inputs, target, *confidence_targets,
                               confidence_weights=(0.5, 2.0),
                               weight=None,
                               reduction="mean",
                               target_block_bytes=2 * 1024 * 1024):
    """Confidence-weighted BCE, computed in Pallas on TPU."""
    assert len(confidence_weights) == len(confidence_targets)
    if weight is not None:
        # TODO(synk): per-element BCE `weight` rescaling not implemented.
        raise NotImplementedError("weight is not supported")
    if reduction not in ("mean", "sum", "none"):
        raise ValueError(f"unknown reduction {reduction!r}")

    orig_shape = inputs.shape
    n_elems = inputs.size

    # Flatten leading dims; keep the last dim on lanes (lane-dense streams).
    if inputs.ndim <= 1:
        to2d = lambda a: a.reshape(1, -1)
    else:
        to2d = lambda a: a.reshape(-1, a.shape[-1])
    inputs2 = to2d(inputs)
    target2 = to2d(target)
    conf2 = [to2d(c) for c in confidence_targets]

    M, D = inputs2.shape
    n_in = 2 + len(conf2)
    n_streams = n_in + (1 if reduction == "none" else 0)

    # Size row-blocks: multiple of 8, ~target_block_bytes per f32 stream block,
    # but keep the double-buffered working set well under the 32 MiB VMEM cap.
    vmem_budget = 32 * 1024 * 1024
    per_stream_budget = min(
        target_block_bytes,
        max(4 * D * 8, (vmem_budget - (4 << 20)) // (2 * n_streams)))
    rows_budget = max(8, (per_stream_budget // (D * 4)) // 8 * 8)
    rows_cap = max(8, (M // 8) * 8)            # largest multiple of 8 <= M
    tile_rows = min(rows_budget, rows_cap)
    num_tiles = pl.cdiv(M, tile_rows)
    needs_mask = (num_tiles * tile_rows) != M

    weights = tuple(float(w) for w in confidence_weights)
    in_spec = pl.BlockSpec((tile_rows, D), lambda i: (i, 0))
    compiler_params = pltpu.CompilerParams(
        dimension_semantics=("parallel",),
        vmem_limit_bytes=vmem_budget,
    )

    if reduction == "none":
        kernel = functools.partial(_elementwise_kernel, weights=weights)
        out = pl.pallas_call(
            kernel,
            out_shape=jax.ShapeDtypeStruct((M, D), inputs.dtype),
            grid_spec=pltpu.PrefetchScalarGridSpec(
                num_scalar_prefetch=0,
                grid=(num_tiles,),
                in_specs=[in_spec] * n_in,
                out_specs=pl.BlockSpec((tile_rows, D), lambda i: (i, 0)),
            ),
            compiler_params=compiler_params,
        )(inputs2, target2, *conf2)
        return out.reshape(orig_shape)

    kernel = functools.partial(_partial_sum_kernel, weights=weights,
                               tile_rows=tile_rows, valid_rows=M,
                               needs_mask=needs_mask)
    partials = pl.pallas_call(
        kernel,
        out_shape=jax.ShapeDtypeStruct((num_tiles * 8, D), jnp.float32),
        grid_spec=pltpu.PrefetchScalarGridSpec(
            num_scalar_prefetch=0,
            grid=(num_tiles,),
            in_specs=[in_spec] * n_in,
            out_specs=pl.BlockSpec((8, D), lambda i: (i, 0)),
        ),
        compiler_params=compiler_params,
    )(inputs2, target2, *conf2)

    total = jnp.sum(partials)
    if reduction == "mean":
        return total / jnp.float32(n_elems)
    return total


if __name__ == "__main__":
    key = jax.random.PRNGKey(0)
    k1, k2, k3, k4 = jax.random.split(key, 4)

    # Small shapes; M deliberately not a multiple of 8 to exercise the masked
    # tail-tile path.
    M, D = 20, 128
    inputs = jax.nn.sigmoid(jax.random.normal(k1, (M, D), jnp.float32))
    target = jax.random.bernoulli(k2, 0.5, (M, D)).astype(jnp.float32)
    conf1 = jax.random.bernoulli(k3, 0.3, (M, D)).astype(jnp.float32)
    conf2 = jax.random.uniform(k4, (M, D), jnp.float32)

    cw = (0.5, 2.0)

    loss_mean = jax.block_until_ready(
        implicit_feedback_bce_loss(inputs, target, conf1, conf2,
                                   confidence_weights=cw, reduction="mean"))
    loss_sum = jax.block_until_ready(
        implicit_feedback_bce_loss(inputs, target, conf1, conf2,
                                   confidence_weights=cw, reduction="sum"))
    loss_none = jax.block_until_ready(
        implicit_feedback_bce_loss(inputs, target, conf1, conf2,
                                   confidence_weights=cw, reduction="none"))

    # Pure-JAX reference (same math as torch's F.binary_cross_entropy).
    conf = 1.0 + cw[0] * conf1 + cw[1] * conf2
    log_p = jnp.maximum(jnp.log(inputs), -100.0)
    log_1mp = jnp.maximum(jnp.log1p(-inputs), -100.0)
    ref_elem = conf * -(target * log_p + (1.0 - target) * log_1mp)

    assert jnp.allclose(loss_mean, ref_elem.mean(), rtol=1e-5, atol=1e-6), \
        (loss_mean, ref_elem.mean())
    assert jnp.allclose(loss_sum, ref_elem.sum(), rtol=1e-5, atol=1e-4), \
        (loss_sum, ref_elem.sum())
    assert jnp.allclose(loss_none, ref_elem, rtol=1e-5, atol=1e-6)

    print("KERNEL_OK")
</pallas_src>

<mosaic_0001>
module attributes {stable_mosaic.version = 11 : i64} {
  func.func @_partial_sum_kernel(%arg0: i32, %arg1: memref<16x128xf32, #tpu.memory_space<vmem>>, %arg2: memref<16x128xf32, #tpu.memory_space<vmem>>, %arg3: memref<16x128xf32, #tpu.memory_space<vmem>>, %arg4: memref<16x128xf32, #tpu.memory_space<vmem>>, %arg5: memref<8x128xf32, #tpu.memory_space<vmem>>) attributes {dimension_semantics = [#tpu.dimension_semantics<parallel>], iteration_bounds = array<i64: 2>, scalar_prefetch = 0 : i64, scratch_operands = 0 : i64, tpu.core_type = #tpu.core_type<tc>, window_params = [{transform_indices = @transform_0, window_bounds = array<i64: 16, 128>}, {transform_indices = @transform_1, window_bounds = array<i64: 16, 128>}, {transform_indices = @transform_2, window_bounds = array<i64: 16, 128>}, {transform_indices = @transform_3, window_bounds = array<i64: 16, 128>}, {transform_indices = @transform_4, window_bounds = array<i64: 8, 128>}]} {
    %c0 = arith.constant 0 : index
    %c0_0 = arith.constant 0 : index
    %0 = vector.load %arg1[%c0, %c0_0] : memref<16x128xf32, #tpu.memory_space<vmem>>, vector<16x128xf32>
    %c0_1 = arith.constant 0 : index
    %c0_2 = arith.constant 0 : index
    %1 = vector.load %arg2[%c0_1, %c0_2] : memref<16x128xf32, #tpu.memory_space<vmem>>, vector<16x128xf32>
    %c0_3 = arith.constant 0 : index
    %c0_4 = arith.constant 0 : index
    %2 = vector.load %arg3[%c0_3, %c0_4] : memref<16x128xf32, #tpu.memory_space<vmem>>, vector<16x128xf32>
    %cst = arith.constant 5.000000e-01 : f32
    %3 = vector.broadcast %cst : f32 to vector<16x128xf32>
    %4 = arith.mulf %3, %2 : vector<16x128xf32>
    %cst_5 = arith.constant 1.000000e+00 : f32
    %5 = vector.broadcast %cst_5 : f32 to vector<16x128xf32>
    %6 = arith.addf %5, %4 : vector<16x128xf32>
    %c0_6 = arith.constant 0 : index
    %c0_7 = arith.constant 0 : index
    %7 = vector.load %arg4[%c0_6, %c0_7] : memref<16x128xf32, #tpu.memory_space<vmem>>, vector<16x128xf32>
    %cst_8 = arith.constant 2.000000e+00 : f32
    %8 = vector.broadcast %cst_8 : f32 to vector<16x128xf32>
    %9 = arith.mulf %8, %7 : vector<16x128xf32>
    %10 = arith.addf %6, %9 : vector<16x128xf32>
    %11 = math.log %0 : vector<16x128xf32>
    %cst_9 = arith.constant -1.000000e+02 : f32
    %12 = vector.broadcast %cst_9 : f32 to vector<16x128xf32>
    %13 = arith.maximumf %11, %12 : vector<16x128xf32>
    %cst_10 = arith.constant 0.000000e+00 : f32
    %14 = vector.broadcast %cst_10 : f32 to vector<16x128xf32>
    %15 = arith.subf %14, %0 : vector<16x128xf32>
    %16 = math.log1p %15 : vector<16x128xf32>
    %cst_11 = arith.constant -1.000000e+02 : f32
    %17 = vector.broadcast %cst_11 : f32 to vector<16x128xf32>
    %18 = arith.maximumf %16, %17 : vector<16x128xf32>
    %19 = arith.subf %13, %18 : vector<16x128xf32>
    %20 = arith.mulf %1, %19 : vector<16x128xf32>
    %21 = arith.addf %18, %20 : vector<16x128xf32>
    %cst_12 = arith.constant 0.000000e+00 : f32
    %22 = vector.broadcast %cst_12 : f32 to vector<16x128xf32>
    %23 = arith.subf %22, %21 : vector<16x128xf32>
    %24 = arith.mulf %10, %23 : vector<16x128xf32>
    %25 = tpu.iota {dimensions = array<i32: 0>} : vector<16x128xi32>
    %c16_i32 = arith.constant 16 : i32
    %26 = arith.muli %arg0, %c16_i32 : i32
    %27 = vector.broadcast %26 : i32 to vector<16x128xi32>
    %28 = arith.addi %27, %25 : vector<16x128xi32>
    %c20_i32 = arith.constant 20 : i32
    %29 = vector.broadcast %c20_i32 : i32 to vector<16x128xi32>
    %30 = arith.cmpi slt, %28, %29 : vector<16x128xi32>
    %cst_13 = arith.constant 0.000000e+00 : f32
    %31 = vector.broadcast %cst_13 : f32 to vector<16x128xf32>
    %32 = arith.select %30, %24, %31 : vector<16x128xi1>, vector<16x128xf32>
    %33 = vector.shape_cast %32 : vector<16x128xf32> to vector<2x8x128xf32>
    %cst_14 = arith.constant dense<0.000000e+00> : vector<8x128xf32>
    %34 = vector.multi_reduction <add>, %33, %cst_14 [0] : vector<2x8x128xf32> to vector<8x128xf32>
    %c0_15 = arith.constant 0 : index
    %c0_16 = arith.constant 0 : index
    %35 = vector.load %arg5[%c0_15, %c0_16] : memref<8x128xf32, #tpu.memory_space<vmem>>, vector<8x128xf32>
    tpu.vector_store %arg5[%c0_15, %c0_16], %34 {strides = array<i32>} : memref<8x128xf32, #tpu.memory_space<vmem>>, vector<8x128xf32>,
    return
  }
  func.func @transform_0(%arg0: i32) -> (i32, i32) {
    %c0_i32 = arith.constant 0 : i32
    %c0_i32_0 = arith.constant 0 : i32
    return %arg0, %c0_i32 : i32, i32
  }
  func.func @transform_1(%arg0: i32) -> (i32, i32) {
    %c0_i32 = arith.constant 0 : i32
    %c0_i32_0 = arith.constant 0 : i32
    return %arg0, %c0_i32 : i32, i32
  }
  func.func @transform_2(%arg0: i32) -> (i32, i32) {
    %c0_i32 = arith.constant 0 : i32
    %c0_i32_0 = arith.constant 0 : i32
    return %arg0, %c0_i32 : i32, i32
  }
  func.func @transform_3(%arg0: i32) -> (i32, i32) {
    %c0_i32 = arith.constant 0 : i32
    %c0_i32_0 = arith.constant 0 : i32
    return %arg0, %c0_i32 : i32, i32
  }
  func.func @transform_4(%arg0: i32) -> (i32, i32) {
    %c0_i32 = arith.constant 0 : i32
    %c0_i32_0 = arith.constant 0 : i32
    return %arg0, %c0_i32 : i32, i32
  }
}

</mosaic_0001>

<bundles_post_ra>
// kernel: tpu_custom_call.1
= control target key start
LH: loop header
LB: loop body
LE: loop exit
PB: predicated region body
PF: predicated region fallthrough
CT: control target
= control target key end

     0   :  { %9 = vsyncpa [#allocation3], 0  ;;  %s1253_s0 = inlined_call_operand.hbm [shape: f32[20,128], index: 0, kind: input, shape index: {}]   ;;  %s1254_s1 = inlined_call_operand.hbm [shape: f32[20,128], index: 1, kind: input, shape index: {}]   ;;  %s1255_s2 = inlined_call_operand.hbm [shape: f32[20,128], index: 2, kind: input, shape index: {}]   ;;  %s1256_s3 = inlined_call_operand.hbm [shape: f32[20,128], index: 3, kind: input, shape index: {}]   ;;  %s1257_s4 = inlined_call_operand.hbm [shape: f32[16,128], index: 4, kind: output, shape index: {}]  }
   0x1   :  { %11 = vsyncpa [#allocation3 + $0x1], 0 }
   0x2   :  { %12 = vsyncpa [#allocation6], 0 }
   0x3   :  { %14 = vsyncpa [#allocation6 + $0x1], 0 }
   0x4   :  { %15 = vsyncpa [#allocation9], 0 }
   0x5   :  { %17 = vsyncpa [#allocation9 + $0x1], 0 }
   0x6   :  { %18 = vsyncpa [#allocation4], 0 }
   0x7   :  { %20 = vsyncpa [#allocation4 + $0x1], 0  ;;  %s925_s15 = smov 0   ;;  %s927_s16 = smov 0  }
   0x8   :  { %s929_s17 = smov 0   ;;  %s931_s18 = smov 0  }
   0x9 LB: > { %s946_s19 = sadd.s32 4294967295, %s885_s18   ;;  %s594_s20 = sadd.s32 4294967294, %s885_s18   ;;  %s885_s18 = sphi %s931_s18, %s1272_s18   ;;  %s881_s17 = sphi %s929_s17, %s1271_s17   ;;  %s877_s16 = sphi %s927_s16, %s1270_s16   ;;  %s873_s15 = sphi %s925_s15, %s1269_s15  }
   0xa   : > { %s950_s21 = sadd.s32 1, %s885_s18   ;;  %s33_s22 = sadd.s32 1, %s881_s17 }
   0xb   : > { %s30_s23 = ssub.s32 %s885_s18, %s950_s21  ;;  %p40_p0 = scmp.ne.s32.totalorder %s881_s17, %s877_s16 }
   0xc   : > { %p31_p1 = scmp.eq.s32.totalorder %s30_s23, 0  ;;  %p41_p2 = scmp.eq.s32.totalorder %s885_s18, 0 }
   0xd   : > { %p46_p3 = scmp.ne.s32.totalorder %s877_s16, %s873_s15  ;;  %p47_p4 = scmp.eq.s32.totalorder %s946_s19, 0 }
   0xe   : > { %s962_s24 = scalar_select %p31_p1, %s881_s17, %s33_s22  }
   0xf   : > { %p964_p5 = por %p41_p2, %p40_p0  ;;  %p968_p6 = por %p47_p4, %p46_p3 }
  0x10   : > { %p148_p7 = scmp.eq.s32.totalorder %s946_s19, 1  ;;  %p154_p8 = scmp.eq.s32.totalorder %s594_s20, 1 }
  0x11   : > { %p1258_p11 = scmp.ge.s32.totalorder %s885_s18, 2 }
  0x12   : > { %p973_p9 = por %p148_p7, %p40_p0  ;;  %p977_p10 = por %p154_p8, %p46_p3 }
  0x13   : > { %170 = sbr.rel (%p1258_p11) target bundleno = 166 (0xa6), region = 16 }
  0x14   : > { %s1262_s27 = scalar_select %p973_p9, 1, 0 }
  0x15   : > { %s1263_s28 = scalar_select %p977_p10, 1, 0 }
  0x1a   : > { %173 = sbr.rel (!%p964_p5) target bundleno = 61 (0x3d), region = 20  ;;  %s174_s29 = sand.u32 (%p964_p5), 1, %s881_s17  }
  0x1b   : > { %s598_s30 = sshll.u32 (%p964_p5), %s885_s18, 1  ;;  %s597_s5 = sshll.u32 (%p964_p5), %s174_s29, 4 }
  0x1c   : > { %s180_s6 = ssub.s32 (%p964_p5), 3, %s598_s30  ;;  %s991_s9 = scalar_lea.sflag (%p964_p5), [#allocation3], %s174_s29 }
  0x1d   : > { %p181_p12 = scmp.lt.s32.totalorder (%p964_p5), %s180_s6, 2  ;;  %s178_s10 = scalar_lea.vmem (%p964_p5), [#allocation2], %s597_s5 }
  0x21   : > { %s1274_s6 = smov (!%p181_p12, %s180_s6), 2 }
  0x22   : > { %s988_s7 = sshll.u32 %s1274_s6, 7 }
  0x23   : > { %s185_s8 = ssub.s32 256, %s988_s7 }
  0x24   : > { %186 = vsyncadd %s991_s9, %s185_s8  ;;  %p600_p13 = scmp.ne.s32.totalorder %s988_s7, 0  ;;  %s636_s11 = sshll.u32 %s885_s18, 8 }
  0x25   : > { %s999_s14 = scalar_lea.hbm %s1253_s0, %s636_s11  ;;  %s191_s20 = sshll.u32 %s178_s10, 4  ;;  %s1001_s20 = int_to_ptr.vmem [resolvable:$true] %s191_s20 }
  0x26   : > { %s699_s22 = scalar_lea.hbm %s999_s14, %s988_s7  ;;  %s703_s30 = scalar_lea.hbm %s1253_s0, 384 }
  0x27   : > { %p700_p0 = scmp.ne.s32.totalorder %s999_s14, %s699_s22  ;;  %p704_p3 = scmp.lt.u32.totalorder %s999_s14, %s1253_s0 }
  0x28   : > { %p705_p4 = scmp.lt.u32.totalorder %s703_s30, %s699_s22  ;;  %p707_p8 = scmp.lt.u32.totalorder %s699_s22, %s999_s14 }
  0x29   : > { %p701_p1 = pnand %p700_p0, %p600_p13 }
  0x2a   : > { %p706_p7 = por %p705_p4, %p704_p3 }
  0x2b   : > { %p702_p2 = pneg %p701_p1 }
  0x2c   : > { %p708_p12 = por %p707_p8, %p706_p7 }
  0x2e   : > { %p709_p11 = pnand %p708_p12, %p702_p2 }
  0x30   : > { %712 = shalt.err (!%p709_p11)
}
  0x31   : > { %s713_s8 = scalar_lea.vmem %s1001_s20, %s988_s7  ;;  %s887_s10 = smov [#allocation2]  }
  0x32   : > { %p714_p0 = scmp.ne.s32.totalorder %s1001_s20, %s713_s8  ;;  %s717_s11 = sshll.u32 %s887_s10, 4  ;;  %s718_s11 = int_to_ptr.vmem [resolvable:$false] %s717_s11 }
  0x33   : > { %s719_s12 = scalar_lea.vmem %s718_s11, 512  ;;  %p720_p9 = scmp.lt.s32.totalorder %s1001_s20, %s718_s11 }
  0x34   : > { %p715_p1 = pnand %p714_p0, %p600_p13  ;;  %p721_p3 = scmp.lt.s32.totalorder %s719_s12, %s713_s8 }
  0x36   : > { %p716_p10 = pneg %p715_p1  ;;  %p722_p4 = por %p721_p3, %p720_p9 }
  0x38   : > { %p723_p7 = pnand %p722_p4, %p716_p10 }
  0x3a   : > { %726 = shalt.err (!%p723_p7)
}
  0x3b   : > { %s888_s13 = smov 128   ;;  %s889_s22 = smov 8  }
  0x3c   : > { %197 = dma.hbm_to_vmem [thread:$0]  (%p600_p13), %s999_s14, %s988_s7, %s1001_s20, %s991_s9, %s888_s13, %s888_s13, %s889_s22  }
  0x3d PF: > { %200 = sbr.rel (!%p964_p5) target bundleno = 96 (0x60), region = 24  ;;  %s201_s23 = sand.u32 (%p964_p5), 1, %s885_s18  }
  0x3e   : > { %s203_s29 = sand.u32 (%p964_p5), 1, %s881_s17   ;;  %s605_s5 = sshll.u32 (%p964_p5), %s885_s18, 1 }
  0x3f   : > { %s604_s30 = sshll.u32 (%p964_p5), %s203_s29, 4  ;;  %s207_s6 = ssub.s32 (%p964_p5), 3, %s605_s5 }
  0x40   : > { %p208_p9 = scmp.lt.s32.totalorder (%p964_p5), %s207_s6, 2  ;;  %s1036_s11 = scalar_lea.sflag (%p964_p5), [#allocation6], %s201_s23 }
  0x41   : > { %s205_s7 = scalar_lea.vmem (%p964_p5), [#allocation5], %s604_s30 }
  0x44   : > { %s1276_s6 = smov (!%p208_p9, %s207_s6), 2 }
  0x45   : > { %s1033_s8 = sshll.u32 %s1276_s6, 7 }
  0x46   : > { %s212_s10 = ssub.s32 256, %s1033_s8 }
  0x47   : > { %213 = vsyncadd %s1036_s11, %s212_s10  ;;  %p607_p10 = scmp.ne.s32.totalorder %s1033_s8, 0  ;;  %s637_s9 = sshll.u32 %s885_s18, 8 }
  0x48   : > { %s1044_s12 = scalar_lea.hbm %s1254_s1, %s637_s9  ;;  %s218_s13 = sshll.u32 %s205_s7, 4  ;;  %s1046_s13 = int_to_ptr.vmem [resolvable:$true] %s218_s13 }
  0x49   : > { %s727_s22 = scalar_lea.hbm %s1044_s12, %s1033_s8  ;;  %s731_s30 = scalar_lea.hbm %s1254_s1, 384 }
  0x4a   : > { %p728_p11 = scmp.ne.s32.totalorder %s1044_s12, %s727_s22  ;;  %p732_p8 = scmp.lt.u32.totalorder %s1044_s12, %s1254_s1 }
  0x4b   : > { %p733_p12 = scmp.lt.u32.totalorder %s731_s30, %s727_s22  ;;  %p735_p1 = scmp.lt.u32.totalorder %s727_s22, %s1044_s12 }
  0x4c   : > { %p729_p13 = pnand %p728_p11, %p607_p10 }
  0x4d   : > { %p734_p0 = por %p733_p12, %p732_p8 }
  0x4e   : > { %p730_p2 = pneg %p729_p13 }
  0x4f   : > { %p736_p3 = por %p735_p1, %p734_p0 }
  0x51   : > { %p737_p4 = pnand %p736_p3, %p730_p2 }
  0x53   : > { %740 = shalt.err (!%p737_p4)
}
  0x54   : > { %s741_s10 = scalar_lea.vmem %s1046_s13, %s1033_s8  ;;  %s890_s7 = smov [#allocation5]  }
  0x55   : > { %p742_p7 = scmp.ne.s32.totalorder %s1046_s13, %s741_s10  ;;  %s745_s9 = sshll.u32 %s890_s7, 4  ;;  %s746_s9 = int_to_ptr.vmem [resolvable:$false] %s745_s9 }
  0x56   : > { %s747_s14 = scalar_lea.vmem %s746_s9, 512  ;;  %p748_p13 = scmp.lt.s32.totalorder %s1046_s13, %s746_s9 }
  0x57   : > { %p743_p9 = pnand %p742_p7, %p607_p10  ;;  %p749_p8 = scmp.lt.s32.totalorder %s747_s14, %s741_s10 }
  0x59   : > { %p744_p11 = pneg %p743_p9  ;;  %p750_p12 = por %p749_p8, %p748_p13 }
  0x5b   : > { %p751_p0 = pnand %p750_p12, %p744_p11 }
  0x5d   : > { %754 = shalt.err (!%p751_p0)
}
  0x5e   : > { %s891_s20 = smov 128   ;;  %s892_s22 = smov 8  }
  0x5f   : > { %224 = dma.hbm_to_vmem [thread:$0]  (%p607_p10), %s1044_s12, %s1033_s8, %s1046_s13, %s1036_s11, %s891_s20, %s891_s20, %s892_s22  }
  0x60 PF: > { %227 = sbr.rel (!%p964_p5) target bundleno = 131 (0x83), region = 28  ;;  %s228_s23 = sand.u32 (%p964_p5), 1, %s885_s18  }
  0x61   : > { %s230_s29 = sand.u32 (%p964_p5), 1, %s881_s17   ;;  %s612_s5 = sshll.u32 (%p964_p5), %s885_s18, 1 }
  0x62   : > { %s611_s30 = sshll.u32 (%p964_p5), %s230_s29, 4  ;;  %s234_s6 = ssub.s32 (%p964_p5), 3, %s612_s5 }
  0x63   : > { %p235_p2 = scmp.lt.s32.totalorder (%p964_p5), %s234_s6, 2  ;;  %s1081_s9 = scalar_lea.sflag (%p964_p5), [#allocation6], %s228_s23 }
  0x64   : > { %s232_s8 = scalar_lea.vmem (%p964_p5), [#allocation7], %s611_s30 }
  0x67   : > { %s1278_s6 = smov (!%p235_p2, %s234_s6), 2 }
  0x68   : > { %s1078_s10 = sshll.u32 %s1278_s6, 7 }
  0x69   : > { %s239_s7 = ssub.s32 256, %s1078_s10 }
  0x6a   : > { %240 = vsyncadd %s1081_s9, %s239_s7  ;;  %p614_p10 = scmp.ne.s32.totalorder %s1078_s10, 0  ;;  %s638_s11 = sshll.u32 %s885_s18, 8 }
  0x6b   : > { %s1089_s14 = scalar_lea.hbm %s1255_s2, %s638_s11  ;;  %s245_s20 = sshll.u32 %s232_s8, 4  ;;  %s1091_s20 = int_to_ptr.vmem [resolvable:$true] %s245_s20 }
  0x6c   : > { %s755_s22 = scalar_lea.hbm %s1089_s14, %s1078_s10  ;;  %s759_s30 = scalar_lea.hbm %s1255_s2, 384 }
  0x6d   : > { %p756_p1 = scmp.ne.s32.totalorder %s1089_s14, %s755_s22  ;;  %p760_p7 = scmp.lt.u32.totalorder %s1089_s14, %s1255_s2 }
  0x6e   : > { %p761_p9 = scmp.lt.u32.totalorder %s759_s30, %s755_s22  ;;  %p763_p13 = scmp.lt.u32.totalorder %s755_s22, %s1089_s14 }
  0x6f   : > { %p757_p3 = pnand %p756_p1, %p614_p10 }
  0x70   : > { %p762_p11 = por %p761_p9, %p760_p7 }
  0x71   : > { %p758_p4 = pneg %p757_p3 }
  0x72   : > { %p764_p8 = por %p763_p13, %p762_p11 }
  0x74   : > { %p765_p12 = pnand %p764_p8, %p758_p4 }
  0x76   : > { %768 = shalt.err (!%p765_p12)
}
  0x77   : > { %s769_s7 = scalar_lea.vmem %s1091_s20, %s1078_s10  ;;  %s893_s8 = smov [#allocation7]  }
  0x78   : > { %p770_p0 = scmp.ne.s32.totalorder %s1091_s20, %s769_s7  ;;  %s773_s11 = sshll.u32 %s893_s8, 4  ;;  %s774_s11 = int_to_ptr.vmem [resolvable:$false] %s773_s11 }
  0x79   : > { %s775_s12 = scalar_lea.vmem %s774_s11, 512  ;;  %p776_p3 = scmp.lt.s32.totalorder %s1091_s20, %s774_s11 }
  0x7a   : > { %p771_p2 = pnand %p770_p0, %p614_p10  ;;  %p777_p7 = scmp.lt.s32.totalorder %s775_s12, %s769_s7 }
  0x7c   : > { %p772_p1 = pneg %p771_p2  ;;  %p778_p9 = por %p777_p7, %p776_p3 }
  0x7e   : > { %p779_p11 = pnand %p778_p9, %p772_p1 }
  0x80   : > { %782 = shalt.err (!%p779_p11)
}
  0x81   : > { %s894_s13 = smov 128   ;;  %s895_s22 = smov 8  }
  0x82   : > { %251 = dma.hbm_to_vmem [thread:$0]  (%p614_p10), %s1089_s14, %s1078_s10, %s1091_s20, %s1081_s9, %s894_s13, %s894_s13, %s895_s22  }
  0x83 PF: > { %254 = sbr.rel (!%p964_p5) target bundleno = 166 (0xa6), region = 32  ;;  %s255_s23 = sand.u32 (%p964_p5), 1, %s881_s17  }
  0x84   : > { %s619_s29 = sshll.u32 (%p964_p5), %s885_s18, 1  ;;  %s618_s30 = sshll.u32 (%p964_p5), %s255_s23, 4 }
  0x85   : > { %s261_s5 = ssub.s32 (%p964_p5), 3, %s619_s29  ;;  %s1125_s8 = scalar_lea.sflag (%p964_p5), [#allocation9], %s255_s23 }
  0x86   : > { %p262_p4 = scmp.lt.s32.totalorder (%p964_p5), %s261_s5, 2  ;;  %s259_s10 = scalar_lea.vmem (%p964_p5), [#allocation8], %s618_s30 }
  0x8a   : > { %s1280_s5 = smov (!%p262_p4, %s261_s5), 2 }
  0x8b   : > { %s1122_s6 = sshll.u32 %s1280_s5, 7 }
  0x8c   : > { %s266_s7 = ssub.s32 256, %s1122_s6 }
  0x8d   : > { %267 = vsyncadd %s1125_s8, %s266_s7  ;;  %p621_p5 = scmp.ne.s32.totalorder %s1122_s6, 0  ;;  %s639_s25 = sshll.u32 %s885_s18, 8 }
  0x8e   : > { %s1133_s20 = scalar_lea.hbm %s1256_s3, %s639_s25  ;;  %s272_s11 = sshll.u32 %s259_s10, 4  ;;  %s1135_s11 = int_to_ptr.vmem [resolvable:$true] %s272_s11 }
  0x8f   : > { %s783_s12 = scalar_lea.hbm %s1133_s20, %s1122_s6  ;;  %s787_s23 = scalar_lea.hbm %s1256_s3, 384 }
  0x90   : > { %p784_p10 = scmp.ne.s32.totalorder %s1133_s20, %s783_s12  ;;  %p788_p12 = scmp.lt.u32.totalorder %s1133_s20, %s1256_s3 }
  0x91   : > { %p789_p0 = scmp.lt.u32.totalorder %s787_s23, %s783_s12  ;;  %p791_p1 = scmp.lt.u32.totalorder %s783_s12, %s1133_s20 }
  0x92   : > { %p785_p13 = pnand %p784_p10, %p621_p5 }
  0x93   : > { %p790_p2 = por %p789_p0, %p788_p12 }
  0x94   : > { %p786_p8 = pneg %p785_p13 }
  0x95   : > { %p792_p3 = por %p791_p1, %p790_p2 }
  0x97   : > { %p793_p7 = pnand %p792_p3, %p786_p8 }
  0x99   : > { %796 = shalt.err (!%p793_p7)
}
  0x9a   : > { %s797_s5 = scalar_lea.vmem %s1135_s11, %s1122_s6  ;;  %s896_s7 = smov [#allocation8]  }
  0x9b   : > { %p798_p9 = scmp.ne.s32.totalorder %s1135_s11, %s797_s5  ;;  %s801_s10 = sshll.u32 %s896_s7, 4  ;;  %s802_s10 = int_to_ptr.vmem [resolvable:$false] %s801_s10 }
  0x9c   : > { %s803_s25 = scalar_lea.vmem %s802_s10, 512  ;;  %p804_p10 = scmp.lt.s32.totalorder %s1135_s11, %s802_s10 }
  0x9d   : > { %p799_p11 = pnand %p798_p9, %p621_p5  ;;  %p805_p13 = scmp.lt.s32.totalorder %s803_s25, %s797_s5 }
  0x9f   : > { %p800_p4 = pneg %p799_p11  ;;  %p806_p12 = por %p805_p13, %p804_p10 }
  0xa1   : > { %p807_p0 = pnand %p806_p12, %p800_p4 }
  0xa3   : > { %810 = shalt.err (!%p807_p0)
}
  0xa4   : > { %s897_s9 = smov 128   ;;  %s898_s14 = smov 8  }
  0xa5   : > { %278 = dma.hbm_to_vmem [thread:$0]  (%p621_p5), %s1133_s20, %s1122_s6, %s1135_s11, %s1125_s8, %s897_s9, %s897_s9, %s898_s14  }
  0xa6 PF: > { %p625_p8 = scmp.ge.s32.totalorder %s885_s18, 1  ;;  %p280_p2 = scmp.lt.s32.totalorder %s885_s18, 3 }
  0xa8   : > { %p281_p1 = pnand %p625_p8, %p280_p2 }
  0xa9   : > { %s1165_s12 = sand.u32 (!%p281_p1), 1, %s877_s16  }
  0xaa   : > { %284 = sbr.rel (%p281_p1) target bundleno = 233 (0xe9), region = 36  ;;  %s1168_s13 = sshll.u32 (!%p281_p1), %s1165_s12, 4 }
  0xab   : > { %s287_s22 = scalar_lea.sflag (!%p281_p1), [#allocation3], %s1165_s12  ;;  %s290_s23 = scalar_lea.vmem (!%p281_p1), [#allocation2], %s1168_s13 }
  0xb1   : > { %856 = dma.done.wait (%p968_p6), %s287_s22, 256  }
  0xb2   : > { %858 = vsyncadd (%p968_p6), %s287_s22, 4294967040  ;;  %s295_s6 = sand.u32 1, %s946_s19   ;;  %s299_s20 = scalar_lea.vmem [#allocation5], %s1168_s13 }
  0xb3   : > { %s296_s8 = scalar_lea.sflag [#allocation6], %s295_s6 }
  0xb4   : > { %860 = dma.done.wait (%p968_p6), %s296_s8, 512  }
  0xb5   : > { %862 = vsyncadd (%p968_p6), %s296_s8, 4294966784  ;;  %s308_s11 = scalar_lea.vmem [#allocation7], %s1168_s13  ;;  %s314_s29 = scalar_lea.sflag [#allocation9], %s1165_s12 }
  0xb6   : > { %s317_s30 = scalar_lea.vmem [#allocation8], %s1168_s13 }
  0xb7   : > { %864 = dma.done.wait (%p968_p6), %s314_s29, 256  }
  0xb8   : > { %866 = vsyncadd (%p968_p6), %s314_s29, 4294967040  ;;  %v377_v0 = vld [vmem:[%s290_s23] sm:$0xff]  ;;  %v378_v1 = vld [vmem:[%s290_s23 + $0x8] sm:$0xff]  ;;  %v431_v15 = vlaneseq  ;;  %s631_s26 = sshll.u32 %s946_s19, 4  ;;  %s630_s5 = sshll.u32 %s1165_s12, 3 }
  0xb9   : > { %691 = vlog2.f32 %v377_v0  ;;  %v399_v2 = vsub.f32 0.0, %v377_v0  ;;  %v400_v3 = vsub.f32 0.0, %v378_v1  ;;  %v381_v16 = vld [vmem:[%s308_s11] sm:$0xff]  ;;  %v382_v20 = vld [vmem:[%s308_s11 + $0x8] sm:$0xff]  ;;  %v435_v38 = vstv %s631_s26  ;;  %s356_s7 = scalar_lea.vmem [#allocation10], %s630_s5  ;;  %s633_s25 = sshll.u32 %s946_s19, 7 }
  0xba   : > { %693 = vlog2.f32 %v378_v1  ;;  %v383_v25 = vmul.f32 0.5, %v381_v16  ;;  %v432_v28 = vshrl.u32 %v431_v15, 7  ;;  %v384_v29 = vmul.f32 0.5, %v382_v20  ;;  %v387_v30 = vld [vmem:[%s317_s30] sm:$0xff]  ;;  %v388_v33 = vld [vmem:[%s317_s30 + $0x8] sm:$0xff]  ;;  %s458_s10 = sshll.u32 %s356_s7, 4  ;;  %s1211_s13 = scalar_lea.hbm %s1257_s4, %s633_s25  ;;  %s1206_s10 = int_to_ptr.vmem [resolvable:$true] %s458_s10 }
  0xbb   : > { %v401_v4 = vadd.f32 1.0, %v399_v2  ;;  %v410_v5 = vadd.f32 1.0, %v400_v3  ;;  %v404_v6 = vmul.f32 -0.5, %v399_v2  ;;  %v413_v7 = vmul.f32 -0.5, %v400_v3  ;;  %v379_v36 = vld [vmem:[%s299_s20] sm:$0xff]  ;;  %v380_v39 = vld [vmem:[%s299_s20 + $0x8] sm:$0xff] }
  0xbc   : > { %v407_v10 = vand.u32 2147483647, %v399_v2  ;;  %v416_v13 = vand.u32 2147483647, %v400_v3  ;;  %v385_v40 = vadd.f32 1.0, %v383_v25  ;;  %v389_v41 = vmul.f32 2.0, %v387_v30 }
  0xbd   : > { %695 = vlog2.f32 %v401_v4  ;;  %v405_v8 = vadd.f32 1.0, %v404_v6  ;;  %v414_v11 = vadd.f32 1.0, %v413_v7  ;;  %v433_v43 = vadd.s32 8, %v432_v28  ;;  %s445_s22 = scalar_lea.sflag [#allocation4], %s1165_s12  ;;  %s811_s23 = scalar_lea.vmem %s1206_s10, 128 }
  0xbe   : > { %697 = vlog2.f32 %v410_v5  ;;  %vm1189_vm0 = vcmp.lt.f32.partialorder %v407_v10, 0.0004427343  ;;  %vm417_vm1 = vcmp.lt.f32.partialorder %v416_v13, 0.0004427343  ;;  %v386_v44 = vadd.f32 1.0, %v384_v29  ;;  %p812_p6 = scmp.ne.s32.totalorder %s1206_s10, %s811_s23  ;;  %p1266_p5 = scmp.ne.s32.totalorder %s1262_s27, 0 }
  0xbf   : > { %v406_v18 = vmul.f32 %v405_v8, %v399_v2  ;;  %v415_v22 = vmul.f32 %v414_v11, %v400_v3  ;;  %v390_v45 = vmul.f32 2.0, %v388_v33  ;;  %v436_v49 = vadd.s32 %v435_v38, %v432_v28  ;;  %s899_s19 = smov [#allocation10]  }
  0xc0   : > { %v391_v50 = vadd.f32 %v389_v41, %v385_v40  ;;  %v437_v52 = vadd.s32 %v435_v38, %v433_v43  ;;  %p813_p3 = pnand %p812_p6, %p1266_p5  ;;  %s815_s6 = sshll.u32 %s899_s19, 4  ;;  %s816_s6 = int_to_ptr.vmem [resolvable:$false] %s815_s6 }
  0xc1   : > { %v392_v53 = vadd.f32 %v390_v45, %v386_v44  ;;  %vm438_vm2 = vcmp.lt.s32.totalorder %v436_v49, 20  ;;  %s817_s8 = scalar_lea.vmem %s816_s6, 256  ;;  %p818_p9 = scmp.lt.s32.totalorder %s1206_s10, %s816_s6 }
  0xc2   : > { %vm439_vm3 = vcmp.lt.s32.totalorder %v437_v52, 20  ;;  %p814_p7 = pneg %p813_p3  ;;  %p819_p11 = scmp.lt.s32.totalorder %s817_s8, %s811_s23 }
  0xc3   : > { %v692_v9 = vpop.eup %691 }
  0xc4   : > { %v694_v12 = vpop.eup %693  ;;  %v394_v14 = vmul.f32 0.6931472, %v692_v9  ;;  %p820_p4 = por %p819_p11, %p818_p9 }
  0xc5   : > { %v396_v17 = vmul.f32 0.6931472, %v694_v12 }
  0xc6   : > { %v397_v26 = vmax.f32 %v394_v14, -100.0  ;;  %p821_p10 = pnand %p820_p4, %p814_p7 }
  0xc7   : > { %v696_v19 = vpop.eup %695  ;;  %v398_v31 = vmax.f32 %v396_v17, -100.0 }
  0xc8   : > { %v698_v23 = vpop.eup %697  ;;  %v403_v24 = vmul.f32 0.6931472, %v696_v19 }
  0xc9   : > { %v412_v27 = vmul.f32 0.6931472, %v698_v23 }
  0xca   : > { %v409_v32 = vsel %vm1189_vm0, %v406_v18, %v403_v24 }
  0xcb   : > { %v418_v34 = vsel %vm417_vm1, %v415_v22, %v412_v27  ;;  %v419_v35 = vmax.f32 %v409_v32, -100.0 }
  0xcc   : > { %v420_v37 = vmax.f32 %v418_v34, -100.0 }
  0xcd   : > { %v421_v42 = vsub.f32 %v397_v26, %v419_v35 }
  0xce   : > { %v422_v46 = vsub.f32 %v398_v31, %v420_v37 }
  0xcf   : > { %v423_v47 = vmul.f32 %v421_v42, %v379_v36 }
  0xd0   : > { %v424_v48 = vmul.f32 %v422_v46, %v380_v39 }
  0xd1   : > { %v425_v51 = vadd.f32 %v423_v47, %v419_v35 }
  0xd2   : > { %v426_v54 = vadd.f32 %v424_v48, %v420_v37 }
  0xd3   : > { %v427_v55 = vsub.f32 0.0, %v425_v51 }
  0xd4   : > { %v428_v56 = vsub.f32 0.0, %v426_v54 }
  0xd5   : > { %v429_v57 = vmul.f32 %v427_v55, %v391_v50 }
  0xd6   : > { %v430_v58 = vmul.f32 %v428_v56, %v392_v53 }
  0xd7   : > { %v440_v59 = vsel %vm438_vm2, %v429_v57, 0.0 }
  0xd8   : > { %v441_v60 = vsel %vm439_vm3, %v430_v58, 0.0 }
  0xd9   : > { %v442_v61 = vadd.f32 %v441_v60, %v440_v59 }
  0xdb   : > { %443 = vst [vmem:[%s356_s7] sm:$0xff] %v442_v61 }
  0xdc   : > { %824 = shalt.err (!%p821_p10)
}
  0xdd   : > { %s825_s12 = scalar_lea.hbm %s1211_s13, 128  ;;  %s829_s29 = scalar_lea.hbm %s1257_s4, 256 }
  0xde   : > { %p826_p13 = scmp.ne.s32.totalorder %s1211_s13, %s825_s12  ;;  %p830_p8 = scmp.lt.u32.totalorder %s1211_s13, %s1257_s4 }
  0xdf   : > { %p831_p2 = scmp.lt.u32.totalorder %s829_s29, %s825_s12  ;;  %p833_p6 = scmp.lt.u32.totalorder %s825_s12, %s1211_s13 }
  0xe0   : > { %p827_p12 = pnand %p826_p13, %p1266_p5 }
  0xe1   : > { %p832_p1 = por %p831_p2, %p830_p8 }
  0xe2   : > { %p828_p0 = pneg %p827_p12 }
  0xe3   : > { %p834_p3 = por %p833_p6, %p832_p1 }
  0xe5   : > { %p835_p7 = pnand %p834_p3, %p828_p0 }
  0xe7   : > { %838 = shalt.err (!%p835_p7)
}
  0xe8   : > { %644 = dma.vmem_to_hbm [thread:$0]  (%p1266_p5), %s1206_s10, 128, %s1211_s13, %s445_s22  }
  0xe9 PF: > { %s470_s5 = sand.u32 1, %s873_s15   ;;  %p1267_p9 = scmp.ne.s32.totalorder %s1263_s28, 0 }
  0xea   : > { %p1268_p11 = scmp.ge.s32.totalorder %s885_s18, 2  ;;  %s471_s7 = scalar_lea.sflag [#allocation4], %s470_s5 }
  0xec   : > { %p647_p4 = pnand %p1268_p11, %p1267_p9 }
  0xee   : > { %868 = dma.done.wait (!%p647_p4), %s471_s7, 128  }
  0xef   : > { %870 = vsyncadd (!%p647_p4), %s471_s7, 4294967168  ;;  %p23_p10 = scmp.ge.s32.totalorder %s950_s21, 4   ;;  %s1269_s15 = smov %s877_s16 }
  0xf0   : > { %s1270_s16 = smov %s881_s17  ;;  %s1271_s17 = smov %s962_s24 }
  0xf1   : > { %s1272_s18 = smov %s950_s21  ;;  %25 = sbr.rel (!%p23_p10) target bundleno = 9 (0x9), region = 118 }
  0xf8   :  { %476 = vsyncpa [#allocation3], 1 }
  0xf9   :  { %478 = vsyncpa [#allocation3 + $0x1], 1 }
  0xfa   :  { %479 = vsyncpa [#allocation6], 1 }
  0xfb   :  { %481 = vsyncpa [#allocation6 + $0x1], 1 }
  0xfc   :  { %482 = vsyncpa [#allocation9], 1 }
  0xfd   :  { %484 = vsyncpa [#allocation9 + $0x1], 1 }
  0xfe   :  { %485 = vsyncpa [#allocation4], 1 }
  0xff   :  { %487 = vsyncpa [#allocation4 + $0x1], 1 }

</bundles_post_ra>
